<compile_context>
chip_gen: v5e
topology: v5e:2x2
jax: 0.10.0
libtpu: 0.0.40
codegen_flags: <defaults>
</compile_context>

<pallas_src>
import functools

import jax
import jax.numpy as jnp
from jax import lax
from jax.experimental import pallas as pl
from jax.experimental.pallas import tpu as pltpu

_BN_EPS = 1e-5
_LEAKY_SLOPE = 0.01  # PyTorch LeakyReLU default


def _round_up(v, m):
    return (v + m - 1) // m * m


def _choose_tile_rows(n, e, pad, budget_bytes=8 << 20):
    """Row-tile size: multiple of 16 (bf16 sublane packing), sized to ~8 MiB VMEM
    (double-buffered bf16 x tile + double-buffered f32 out tile + live f32
    intermediates), so the default scoped-VMEM limits (16 MiB v5e / 32 MiB v6e, v7x)
    are never approached."""
    per_row = 2 * (2 * e) + 2 * (4 * pad) + 4 * e + 2 * 4 * pad
    tn = budget_bytes // max(per_row, 1)
    tn = max(16, min(2048, (tn // 16) * 16))
    return min(tn, _round_up(n, 16))


# --------------------------------------------------------------------------- #
# Kernel 1: per-tile activations + masked Chan/Welford BN statistics.
# --------------------------------------------------------------------------- #
def _stats_kernel(x_ref, wfc_ref, bfc_ref, w1_ref, b1_ref,
                  mean_ref, m2_ref, *, tile_rows: int, n_true: int):
    i = pl.program_id(0)

    # fc1 + ReLU (bf16 MXU operands, f32 accumulation & elementwise)
    x = x_ref[...]                                                         # (TN, E) bf16
    h = jnp.dot(x, wfc_ref[...], preferred_element_type=jnp.float32) + bfc_ref[...]
    h = jnp.maximum(h, 0.0)

    # fused mu|sigma first Linear, lane-padded to PAD columns (zero weight padding)
    y = jnp.dot(h.astype(jnp.bfloat16), w1_ref[...],
                preferred_element_type=jnp.float32) + b1_ref[...]          # (TN, PAD) f32

    # Mask rows beyond the true N (zero-padded input rows must not corrupt BN stats).
    row = i * tile_rows + lax.broadcasted_iota(jnp.int32, (tile_rows, 1), 0)
    valid = row < n_true                                                   # (TN, 1)

    cnt = jnp.minimum(tile_rows, n_true - i * tile_rows).astype(jnp.float32)
    run = (i * tile_rows).astype(jnp.float32)   # rows already accumulated (prior tiles full)

    yv = jnp.where(valid, y, 0.0)
    tile_mean = jnp.sum(yv, axis=0, keepdims=True) / cnt                   # (1, PAD)
    d = jnp.where(valid, y - tile_mean, 0.0)
    tile_m2 = jnp.sum(d * d, axis=0, keepdims=True)                        # centered sumsq

    @pl.when(i == 0)
    def _():
        mean_ref[...] = tile_mean
        m2_ref[...] = tile_m2

    @pl.when(i > 0)
    def _():
        # Chan parallel-variance combination: robust vs E[y^2]-mean^2 cancellation.
        tot = run + cnt
        delta = tile_mean - mean_ref[...]
        mean_ref[...] = mean_ref[...] + delta * (cnt / tot)
        m2_ref[...] = m2_ref[...] + tile_m2 + (delta * delta) * (run * cnt / tot)


# --------------------------------------------------------------------------- #
# Kernel 2: apply folded BN affine + LeakyReLU + fused second Linear + exp/clamp.
# --------------------------------------------------------------------------- #
def _apply_kernel(x_ref, wfc_ref, bfc_ref, w1_ref, b1_ref, s_ref, t_ref,
                  w2_ref, b2_ref, out_ref, *, p_dims: int, var_floor: float):
    x = x_ref[...]                                                         # (TN, E) bf16
    h = jnp.dot(x, wfc_ref[...], preferred_element_type=jnp.float32) + bfc_ref[...]
    h = jnp.maximum(h, 0.0)

    y = jnp.dot(h.astype(jnp.bfloat16), w1_ref[...],
                preferred_element_type=jnp.float32) + b1_ref[...]          # (TN, PAD)

    # BatchNorm folded to one affine (s, t precomputed from global batch stats).
    yb = y * s_ref[...] + t_ref[...]
    ya = jnp.where(yb >= 0.0, yb, _LEAKY_SLOPE * yb)                       # LeakyReLU

    # Block-diagonal second Linear (loc | scale | zero padding), lane-dense output.
    # TODO(synk): when p_dims >= 128, split into two (N,P)@(P,P) matmuls to avoid
    # structurally-zero MXU FLOPs and exp over the loc half; at 2P<=128 padding is free.
    z = jnp.dot(ya.astype(jnp.bfloat16), w2_ref[...],
                preferred_element_type=jnp.float32) + b2_ref[...]          # (TN, PAD)

    col = lax.broadcasted_iota(jnp.int32, (1, z.shape[1]), 1)              # (1, PAD) row
    is_sigma = jnp.logical_and(col >= p_dims, col < 2 * p_dims)
    sigma_half = jnp.maximum(jnp.exp(z), var_floor) * 0.5                  # clamp then /2
    out_ref[...] = jnp.where(is_sigma, sigma_half, z).astype(out_ref.dtype)


# --------------------------------------------------------------------------- #
# Parameter packing — hoisted out of the per-call path (once per parameter update).
# --------------------------------------------------------------------------- #
def pack_mutual_info_params(params):
    e = params["w_fc1"].shape[0]
    p = params["w2_mu"].shape[1]
    pad = _round_up(2 * p, 128)                  # lane-dense mu|sigma slab width
    f32, bf16 = jnp.float32, jnp.bfloat16

    w1p = (jnp.zeros((e, pad), f32)
           .at[:, :p].set(params["w1_mu"]).at[:, p:2 * p].set(params["w1_sigma"]))
    b1p = (jnp.zeros((1, pad), f32)
           .at[:, :p].set(params["b1_mu"]).at[:, p:2 * p].set(params["b1_sigma"]))
    gp = (jnp.zeros((1, pad), f32)
          .at[:, :p].set(params["gamma_mu"]).at[:, p:2 * p].set(params["gamma_sigma"]))
    bp = (jnp.zeros((1, pad), f32)
          .at[:, :p].set(params["beta_mu"]).at[:, p:2 * p].set(params["beta_sigma"]))
    w2p = (jnp.zeros((pad, pad), f32)
           .at[:p, :p].set(params["w2_mu"]).at[p:2 * p, p:2 * p].set(params["w2_sigma"]))
    b2p = (jnp.zeros((1, pad), f32)
           .at[:, :p].set(params["b2_mu"]).at[:, p:2 * p].set(params["b2_sigma"]))

    return {
        "p_dims": p, "e": e, "pad": pad,
        "w_fc1": params["w_fc1"].astype(bf16), "b_fc1": params["b_fc1"].astype(f32),
        "w1p": w1p.astype(bf16), "b1p": b1p,
        "gamma_p": gp, "beta_p": bp,
        "w2p": w2p.astype(bf16), "b2p": b2p,
    }


# --------------------------------------------------------------------------- #
# Forward wrapper.
# --------------------------------------------------------------------------- #
def mutual_info_forward(input_hidden_out, packed, *, var_floor=2e-3,
                        out_dtype=jnp.float32):
    """Returns (loc, scale) of the Normal distribution, each of shape (b, a, p_dims).

    `out_dtype=jnp.bfloat16` halves output-slab HBM traffic if downstream tolerates it;
    feeding the fused (N, PAD) slab straight into a downstream Pallas consumer (lane
    slicing via BlockSpec) avoids the wrapper slice round trip entirely."""
    b, a, e = input_hidden_out.shape
    n = b * a
    p = packed["p_dims"]
    pad = packed["pad"]
    assert 2 * p <= pad, "fused mu|sigma slab assumes 2*p_dims <= PAD (see TODO in kernel)"

    tn = _choose_tile_rows(n, e, pad)
    n_pad = _round_up(n, tn)
    num_tiles = n_pad // tn

    # bf16 input transport (halves dominant HBM->VMEM DMA bytes); zero-pad rows to a
    # tile multiple (padded rows are masked out of BN stats inside the stats kernel).
    x2 = input_hidden_out.reshape(n, e).astype(jnp.bfloat16)
    if n_pad > n:
        x2 = jnp.pad(x2, ((0, n_pad - n), (0, 0)))

    x_spec = pl.BlockSpec((tn, e), lambda i: (i, 0))
    const_specs = [
        pl.BlockSpec(packed["w_fc1"].shape, lambda i: (0, 0)),
        pl.BlockSpec(packed["b_fc1"].shape, lambda i: (0, 0)),
        pl.BlockSpec(packed["w1p"].shape, lambda i: (0, 0)),
        pl.BlockSpec(packed["b1p"].shape, lambda i: (0, 0)),
    ]
    weight_args = (packed["w_fc1"], packed["b_fc1"], packed["w1p"], packed["b1p"])

    # ---- phase 1: global BN statistics (reduction over the row grid axis) --------
    stats_cost = pl.CostEstimate(
        flops=2 * n_pad * (e * e + e * pad),
        transcendentals=0,
        bytes_accessed=(2 * n_pad * e + 2 * (e * e + e * pad)
                        + 4 * (e + pad) + 2 * 4 * pad))
    stats_kernel = functools.partial(_stats_kernel, tile_rows=tn, n_true=n)
    mean, m2 = pl.pallas_call(
        stats_kernel,
        out_shape=(jax.ShapeDtypeStruct((1, pad), jnp.float32),
                   jax.ShapeDtypeStruct((1, pad), jnp.float32)),
        grid=(num_tiles,),
        in_specs=[x_spec] + const_specs,
        out_specs=(pl.BlockSpec((1, pad), lambda i: (0, 0)),
                   pl.BlockSpec((1, pad), lambda i: (0, 0))),
        compiler_params=pltpu.CompilerParams(dimension_semantics=("arbitrary",)),
        cost_estimate=stats_cost,
    )(x2, *weight_args)

    # Fold BatchNorm1d (training-mode batch stats, biased variance) to one affine.
    var = m2 * (1.0 / n)
    s_vec = packed["gamma_p"] * lax.rsqrt(var + _BN_EPS)
    t_vec = packed["beta_p"] - mean * s_vec

    # ---- phase 2: apply (row axis "parallel" -> v7x's 2 TensorCores split rows) ---
    apply_cost = pl.CostEstimate(
        flops=2 * n_pad * (e * e + e * pad + pad * pad),
        transcendentals=n_pad * pad,
        bytes_accessed=(2 * n_pad * e + jnp.dtype(out_dtype).itemsize * n_pad * pad
                        + 2 * (e * e + e * pad + pad * pad) + 4 * (e + 5 * pad)))
    apply_kernel = functools.partial(_apply_kernel, p_dims=p, var_floor=float(var_floor))
    out = pl.pallas_call(
        apply_kernel,
        out_shape=jax.ShapeDtypeStruct((n_pad, pad), out_dtype),
        grid=(num_tiles,),
        in_specs=[x_spec] + const_specs + [
            pl.BlockSpec((1, pad), lambda i: (0, 0)),        # s (folded BN scale)
            pl.BlockSpec((1, pad), lambda i: (0, 0)),        # t (folded BN shift)
            pl.BlockSpec(packed["w2p"].shape, lambda i: (0, 0)),
            pl.BlockSpec(packed["b2p"].shape, lambda i: (0, 0)),
        ],
        out_specs=pl.BlockSpec((tn, pad), lambda i: (i, 0)),
        compiler_params=pltpu.CompilerParams(dimension_semantics=("parallel",)),
        cost_estimate=apply_cost,
    )(x2, *weight_args, s_vec, t_vec, packed["w2p"], packed["b2p"])

    loc = out[:n, :p].reshape(b, a, p)
    scale = out[:n, p:2 * p].reshape(b, a, p)
    # TODO(synk): torch.distributions.Normal itself has no Pallas equivalent; we return (loc, scale).
    return loc, scale


# --------------------------------------------------------------------------- #
# Pure-JAX f32 reference mirroring the PyTorch forward (training-mode BN).
# --------------------------------------------------------------------------- #
def _mutual_info_reference(input_hidden_out, params, *, var_floor=2e-3):
    b, a, e = input_hidden_out.shape
    x = input_hidden_out.reshape(-1, e).astype(jnp.float32)
    h = jnp.maximum(x @ params["w_fc1"] + params["b_fc1"], 0.0)

    def branch(w1, b1, g, bb, w2, b2):
        y = h @ w1 + b1
        mean = jnp.mean(y, axis=0, keepdims=True)
        var = jnp.mean((y - mean) ** 2, axis=0, keepdims=True)
        yb = (y - mean) * lax.rsqrt(var + _BN_EPS) * g + bb
        ya = jnp.where(yb >= 0.0, yb, _LEAKY_SLOPE * yb)
        return ya @ w2 + b2

    p_mu = branch(params["w1_mu"], params["b1_mu"], params["gamma_mu"],
                  params["beta_mu"], params["w2_mu"], params["b2_mu"])
    p_sig = branch(params["w1_sigma"], params["b1_sigma"], params["gamma_sigma"],
                   params["beta_sigma"], params["w2_sigma"], params["b2_sigma"])
    p_sig = jnp.maximum(jnp.exp(p_sig), var_floor)
    p = p_mu.shape[-1]
    # Faithful to PyTorch operator precedence: p_sigma ** 1 / 2 == p_sigma / 2.
    return p_mu.reshape(b, a, p), (p_sig * 0.5).reshape(b, a, p)


def init_params(key, rnn_hidden_dim, p_dims):
    """Deterministic synthetic parameters (PyTorch Linear weights pre-transposed to (in, out))."""
    ks = jax.random.split(key, 12)
    s = 0.1
    f32 = jnp.float32
    return {
        "w_fc1": s * jax.random.normal(ks[0], (rnn_hidden_dim, rnn_hidden_dim), f32),
        "b_fc1": s * jax.random.normal(ks[1], (1, rnn_hidden_dim), f32),
        "w1_mu": s * jax.random.normal(ks[2], (rnn_hidden_dim, p_dims), f32),
        "b1_mu": s * jax.random.normal(ks[3], (1, p_dims), f32),
        "gamma_mu": jnp.ones((1, p_dims), f32),
        "beta_mu": jnp.zeros((1, p_dims), f32),
        "w2_mu": s * jax.random.normal(ks[4], (p_dims, p_dims), f32),
        "b2_mu": s * jax.random.normal(ks[5], (1, p_dims), f32),
        "w1_sigma": s * jax.random.normal(ks[6], (rnn_hidden_dim, p_dims), f32),
        "b1_sigma": s * jax.random.normal(ks[7], (1, p_dims), f32),
        "gamma_sigma": jnp.ones((1, p_dims), f32),
        "beta_sigma": jnp.zeros((1, p_dims), f32),
        "w2_sigma": s * jax.random.normal(ks[8], (p_dims, p_dims), f32),
        "b2_sigma": s * jax.random.normal(ks[9], (1, p_dims), f32),
    }


if __name__ == "__main__":
    # Small shapes consistent with the module: b=batch, a=agents, e=rnn_hidden_dim, p_dims.
    B, A, H, P = 2, 4, 32, 16
    VAR_FLOOR = 2e-3

    key = jax.random.PRNGKey(0)
    k_in, k_params = jax.random.split(key)
    x = jax.random.normal(k_in, (B, A, H), jnp.float32)
    params = init_params(k_params, H, P)

    packed = pack_mutual_info_params(params)   # hoisted: once per parameter update
    loc, scale = mutual_info_forward(x, packed, var_floor=VAR_FLOOR)
    loc = jax.block_until_ready(loc)
    scale = jax.block_until_ready(scale)

    assert loc.shape == (B, A, P) and scale.shape == (B, A, P)
    assert bool(jnp.all(scale >= VAR_FLOOR * 0.5))  # clamp then /2

    # Pure-JAX f32 reference; loose tolerance accounts for bf16 MXU operands.
    loc_ref, scale_ref = _mutual_info_reference(x, params, var_floor=VAR_FLOOR)
    assert bool(jnp.allclose(loc, loc_ref, rtol=5e-2, atol=5e-2))
    assert bool(jnp.allclose(scale, scale_ref, rtol=5e-2, atol=5e-2))

    print("KERNEL_OK")
</pallas_src>

<mosaic_0001>
module attributes {stable_mosaic.version = 11 : i64} {
  func.func @_stats_kernel(%arg0: i32, %arg1: memref<16x32xbf16, #tpu.memory_space<vmem>>, %arg2: memref<32x32xbf16, #tpu.memory_space<vmem>>, %arg3: memref<1x32xf32, #tpu.memory_space<vmem>>, %arg4: memref<32x128xbf16, #tpu.memory_space<vmem>>, %arg5: memref<1x128xf32, #tpu.memory_space<vmem>>, %arg6: memref<1x128xf32, #tpu.memory_space<vmem>>, %arg7: memref<1x128xf32, #tpu.memory_space<vmem>>) attributes {dimension_semantics = [#tpu.dimension_semantics<arbitrary>], iteration_bounds = array<i64: 1>, scalar_prefetch = 0 : i64, scratch_operands = 0 : i64, tpu.core_type = #tpu.core_type<tc>, window_params = [{transform_indices = @transform_0, window_bounds = array<i64: 16, 32>}, {pipeline_mode = #tpu.pipeline_mode<synchronous>, transform_indices = @transform_1, window_bounds = array<i64: 32, 32>}, {pipeline_mode = #tpu.pipeline_mode<synchronous>, transform_indices = @transform_2, window_bounds = array<i64: 1, 32>}, {pipeline_mode = #tpu.pipeline_mode<synchronous>, transform_indices = @transform_3, window_bounds = array<i64: 32, 128>}, {pipeline_mode = #tpu.pipeline_mode<synchronous>, transform_indices = @transform_4, window_bounds = array<i64: 1, 128>}, {pipeline_mode = #tpu.pipeline_mode<synchronous>, transform_indices = @transform_5, window_bounds = array<i64: 1, 128>}, {pipeline_mode = #tpu.pipeline_mode<synchronous>, transform_indices = @transform_6, window_bounds = array<i64: 1, 128>}]} {
    %c0 = arith.constant 0 : index
    %c0_0 = arith.constant 0 : index
    %0 = vector.load %arg1[%c0, %c0_0] : memref<16x32xbf16, #tpu.memory_space<vmem>>, vector<16x32xbf16>
    %c0_1 = arith.constant 0 : index
    %c0_2 = arith.constant 0 : index
    %1 = vector.load %arg2[%c0_1, %c0_2] : memref<32x32xbf16, #tpu.memory_space<vmem>>, vector<32x32xbf16>
    %cst = arith.constant dense<0.000000e+00> : vector<16x32xf32>
    %2 = tpu.matmul %0, %1, %cst {dimension_numbers = #tpu.dot_dimension_numbers<[1], [0], [0], [1], [0, 0, 1, 1], [], []>} : vector<16x32xbf16>, vector<32x32xbf16>, vector<16x32xf32> -> vector<16x32xf32>
    %c0_3 = arith.constant 0 : index
    %c0_4 = arith.constant 0 : index
    %3 = vector.load %arg3[%c0_3, %c0_4] : memref<1x32xf32, #tpu.memory_space<vmem>>, vector<1x32xf32>
    %4 = vector.broadcast %3 : vector<1x32xf32> to vector<16x32xf32>
    %5 = arith.addf %2, %4 : vector<16x32xf32>
    %cst_5 = arith.constant 0.000000e+00 : f32
    %6 = vector.broadcast %cst_5 : f32 to vector<16x32xf32>
    %7 = arith.maximumf %5, %6 : vector<16x32xf32>
    %8 = arith.truncf %7 : vector<16x32xf32> to vector<16x32xbf16>
    %c0_6 = arith.constant 0 : index
    %c0_7 = arith.constant 0 : index
    %9 = vector.load %arg4[%c0_6, %c0_7] : memref<32x128xbf16, #tpu.memory_space<vmem>>, vector<32x128xbf16>
    %cst_8 = arith.constant dense<0.000000e+00> : vector<16x128xf32>
    %10 = tpu.matmul %8, %9, %cst_8 {dimension_numbers = #tpu.dot_dimension_numbers<[1], [0], [0], [1], [0, 0, 1, 1], [], []>} : vector<16x32xbf16>, vector<32x128xbf16>, vector<16x128xf32> -> vector<16x128xf32>
    %c0_9 = arith.constant 0 : index
    %c0_10 = arith.constant 0 : index
    %11 = vector.load %arg5[%c0_9, %c0_10] : memref<1x128xf32, #tpu.memory_space<vmem>>, vector<1x128xf32>
    %12 = vector.broadcast %11 : vector<1x128xf32> to vector<16x128xf32>
    %13 = arith.addf %10, %12 : vector<16x128xf32>
    %c16_i32 = arith.constant 16 : i32
    %14 = arith.muli %arg0, %c16_i32 : i32
    %15 = tpu.iota {dimensions = array<i32: 0>} : vector<16x1xi32>
    %16 = vector.broadcast %14 : i32 to vector<16x1xi32>
    %17 = arith.addi %16, %15 : vector<16x1xi32>
    %c8_i32 = arith.constant 8 : i32
    %18 = vector.broadcast %c8_i32 : i32 to vector<16x1xi32>
    %19 = arith.cmpi slt, %17, %18 : vector<16x1xi32>
    %c16_i32_11 = arith.constant 16 : i32
    %20 = arith.muli %arg0, %c16_i32_11 : i32
    %c8_i32_12 = arith.constant 8 : i32
    %21 = arith.subi %c8_i32_12, %20 : i32
    %c16_i32_13 = arith.constant 16 : i32
    %22 = arith.minsi %c16_i32_13, %21 : i32
    %23 = arith.sitofp %22 : i32 to f32
    %c16_i32_14 = arith.constant 16 : i32
    %24 = arith.muli %arg0, %c16_i32_14 : i32
    %25 = arith.sitofp %24 : i32 to f32
    %cst_15 = arith.constant 0.000000e+00 : f32
    %26 = vector.shape_cast %19 : vector<16x1xi1> to vector<16x1xi1>
    %27 = vector.broadcast %26 : vector<16x1xi1> to vector<16x128xi1>
    %28 = vector.broadcast %cst_15 : f32 to vector<16x128xf32>
    %29 = arith.select %27, %13, %28 : vector<16x128xi1>, vector<16x128xf32>
    %cst_16 = arith.constant dense<0.000000e+00> : vector<128xf32>
    %30 = vector.multi_reduction <add>, %29, %cst_16 [0] : vector<16x128xf32> to vector<128xf32>
    %31 = vector.shape_cast %30 : vector<128xf32> to vector<1x128xf32>
    %32 = vector.broadcast %23 : f32 to vector<1x128xf32>
    %33 = arith.divf %31, %32 : vector<1x128xf32>
    %34 = vector.broadcast %33 : vector<1x128xf32> to vector<16x128xf32>
    %35 = arith.subf %13, %34 : vector<16x128xf32>
    %cst_17 = arith.constant 0.000000e+00 : f32
    %36 = vector.shape_cast %19 : vector<16x1xi1> to vector<16x1xi1>
    %37 = vector.broadcast %36 : vector<16x1xi1> to vector<16x128xi1>
    %38 = vector.broadcast %cst_17 : f32 to vector<16x128xf32>
    %39 = arith.select %37, %35, %38 : vector<16x128xi1>, vector<16x128xf32>
    %40 = arith.mulf %39, %39 : vector<16x128xf32>
    %cst_18 = arith.constant dense<0.000000e+00> : vector<128xf32>
    %41 = vector.multi_reduction <add>, %40, %cst_18 [0] : vector<16x128xf32> to vector<128xf32>
    %42 = vector.shape_cast %41 : vector<128xf32> to vector<1x128xf32>
    %c0_i32 = arith.constant 0 : i32
    %43 = arith.cmpi eq, %arg0, %c0_i32 : i32
    %44 = arith.extui %43 : i1 to i32
    %c0_i32_19 = arith.constant 0 : i32
    %45 = arith.cmpi ne, %44, %c0_i32_19 : i32
    scf.if %45 {
      %c0_22 = arith.constant 0 : index
      %c0_23 = arith.constant 0 : index
      %49 = vector.load %arg6[%c0_22, %c0_23] : memref<1x128xf32, #tpu.memory_space<vmem>>, vector<1x128xf32>
      tpu.vector_store %arg6[%c0_22, %c0_23], %33 {strides = array<i32>} : memref<1x128xf32, #tpu.memory_space<vmem>>, vector<1x128xf32>,
      %c0_24 = arith.constant 0 : index
      %c0_25 = arith.constant 0 : index
      %50 = vector.load %arg7[%c0_24, %c0_25] : memref<1x128xf32, #tpu.memory_space<vmem>>, vector<1x128xf32>
      tpu.vector_store %arg7[%c0_24, %c0_25], %42 {strides = array<i32>} : memref<1x128xf32, #tpu.memory_space<vmem>>, vector<1x128xf32>,
    } else {
    }
    %c0_i32_20 = arith.constant 0 : i32
    %46 = arith.cmpi sgt, %arg0, %c0_i32_20 : i32
    %47 = arith.extui %46 : i1 to i32
    %c0_i32_21 = arith.constant 0 : i32
    %48 = arith.cmpi ne, %47, %c0_i32_21 : i32
    scf.if %48 {
      %49 = arith.addf %25, %23 : f32
      %c0_22 = arith.constant 0 : index
      %c0_23 = arith.constant 0 : index
      %50 = vector.load %arg6[%c0_22, %c0_23] : memref<1x128xf32, #tpu.memory_space<vmem>>, vector<1x128xf32>
      %51 = arith.subf %33, %50 : vector<1x128xf32>
      %c0_24 = arith.constant 0 : index
      %c0_25 = arith.constant 0 : index
      %52 = vector.load %arg6[%c0_24, %c0_25] : memref<1x128xf32, #tpu.memory_space<vmem>>, vector<1x128xf32>
      %53 = arith.divf %23, %49 : f32
      %54 = vector.broadcast %53 : f32 to vector<1x128xf32>
      %55 = arith.mulf %51, %54 : vector<1x128xf32>
      %56 = arith.addf %52, %55 : vector<1x128xf32>
      %c0_26 = arith.constant 0 : index
      %c0_27 = arith.constant 0 : index
      %57 = vector.load %arg6[%c0_26, %c0_27] : memref<1x128xf32, #tpu.memory_space<vmem>>, vector<1x128xf32>
      tpu.vector_store %arg6[%c0_26, %c0_27], %56 {strides = array<i32>} : memref<1x128xf32, #tpu.memory_space<vmem>>, vector<1x128xf32>,
      %c0_28 = arith.constant 0 : index
      %c0_29 = arith.constant 0 : index
      %58 = vector.load %arg7[%c0_28, %c0_29] : memref<1x128xf32, #tpu.memory_space<vmem>>, vector<1x128xf32>
      %59 = arith.addf %58, %42 : vector<1x128xf32>
      %60 = arith.mulf %51, %51 : vector<1x128xf32>
      %61 = arith.mulf %25, %23 : f32
      %62 = arith.divf %61, %49 : f32
      %63 = vector.broadcast %62 : f32 to vector<1x128xf32>
      %64 = arith.mulf %60, %63 : vector<1x128xf32>
      %65 = arith.addf %59, %64 : vector<1x128xf32>
      %c0_30 = arith.constant 0 : index
      %c0_31 = arith.constant 0 : index
      %66 = vector.load %arg7[%c0_30, %c0_31] : memref<1x128xf32, #tpu.memory_space<vmem>>, vector<1x128xf32>
      tpu.vector_store %arg7[%c0_30, %c0_31], %65 {strides = array<i32>} : memref<1x128xf32, #tpu.memory_space<vmem>>, vector<1x128xf32>,
    } else {
    }
    return
  }
  func.func @transform_0(%arg0: i32) -> (i32, i32) {
    %c0_i32 = arith.constant 0 : i32
    %c0_i32_0 = arith.constant 0 : i32
    return %arg0, %c0_i32 : i32, i32
  }
  func.func @transform_1(%arg0: i32) -> (i32, i32) {
    %c0_i32 = arith.constant 0 : i32
    %c0_i32_0 = arith.constant 0 : i32
    %c0_i32_1 = arith.constant 0 : i32
    return %c0_i32, %c0_i32_0 : i32, i32
  }
  func.func @transform_2(%arg0: i32) -> (i32, i32) {
    %c0_i32 = arith.constant 0 : i32
    %c0_i32_0 = arith.constant 0 : i32
    %c0_i32_1 = arith.constant 0 : i32
    return %c0_i32, %c0_i32_0 : i32, i32
  }
  func.func @transform_3(%arg0: i32) -> (i32, i32) {
    %c0_i32 = arith.constant 0 : i32
    %c0_i32_0 = arith.constant 0 : i32
    %c0_i32_1 = arith.constant 0 : i32
    return %c0_i32, %c0_i32_0 : i32, i32
  }
  func.func @transform_4(%arg0: i32) -> (i32, i32) {
    %c0_i32 = arith.constant 0 : i32
    %c0_i32_0 = arith.constant 0 : i32
    %c0_i32_1 = arith.constant 0 : i32
    return %c0_i32, %c0_i32_0 : i32, i32
  }
  func.func @transform_5(%arg0: i32) -> (i32, i32) {
    %c0_i32 = arith.constant 0 : i32
    %c0_i32_0 = arith.constant 0 : i32
    %c0_i32_1 = arith.constant 0 : i32
    return %c0_i32, %c0_i32_0 : i32, i32
  }
  func.func @transform_6(%arg0: i32) -> (i32, i32) {
    %c0_i32 = arith.constant 0 : i32
    %c0_i32_0 = arith.constant 0 : i32
    %c0_i32_1 = arith.constant 0 : i32
    return %c0_i32, %c0_i32_0 : i32, i32
  }
}

</mosaic_0001>

<bundles_post_ra>
// kernel: tpu_custom_call.1
= control target key start
LH: loop header
LB: loop body
LE: loop exit
PB: predicated region body
PF: predicated region fallthrough
CT: control target
= control target key end

     0   :  { %12 = vsyncpa [#allocation3], 0  ;;  %s537_s0 = inlined_call_operand.hbm [shape: bf16[16,32], index: 0, kind: input, shape index: {}]   ;;  %s538_s1 = inlined_call_operand.hbm [shape: bf16[32,32], index: 1, kind: input, shape index: {}]   ;;  %s539_s2 = inlined_call_operand.vmem [shape: f32[1,32], index: 2, kind: input, shape index: {}]   ;;  %s540_s3 = inlined_call_operand.hbm [shape: bf16[32,128], index: 3, kind: input, shape index: {}]   ;;  %s541_s4 = inlined_call_operand.vmem [shape: f32[1,128], index: 4, kind: input, shape index: {}]   ;;  %s542_s5 = inlined_call_operand.hbm [shape: f32[1,128], index: 5, kind: output, shape index: {0}]   ;;  %s543_s6 = inlined_call_operand.hbm [shape: f32[1,128], index: 6, kind: output, shape index: {1}]  }
   0x1   :  { %13 = vsyncpa [#allocation6], 0 }
   0x2   :  { %14 = vsyncpa [#allocation4], 0 }
   0x3   :  { %15 = vsyncpa [#allocation10], 0  ;;  %s33_s23 = sshll.u32 %s538_s1, 4  ;;  %s473_s24 = smov [#allocation5]   ;;  %s34_s23 = int_to_ptr.hbm [resolvable:$true] %s33_s23 }
   0x4   :  { %s35_s25 = sshll.u32 %s473_s24, 4  ;;  %s20_s28 = sshll.u32 %s537_s0, 4  ;;  %s36_s25 = int_to_ptr.vmem [resolvable:$true] %s35_s25  ;;  %s21_s28 = int_to_ptr.hbm [resolvable:$true] %s20_s28 }
   0x5   :  { %s474_s29 = smov 64   ;;  %s475_s30 = smov 4  }
   0x6   :  { %41 = dma.hbm_to_vmem [thread:$0]  %s34_s23, 256, %s36_s25, [#allocation6], %s474_s29, %s474_s29, %s475_s30  }
   0x7   :  { %s476_s7 = smov [#allocation2]   ;;  %s48_s11 = sshll.u32 %s540_s3, 4  ;;  %s49_s11 = int_to_ptr.hbm [resolvable:$true] %s48_s11 }
   0x8   :  { %s22_s8 = sshll.u32 %s476_s7, 4  ;;  %s477_s1 = smov [#allocation7]   ;;  %s23_s8 = int_to_ptr.vmem [resolvable:$true] %s22_s8 }
   0x9   :  { %28 = dma.hbm_to_vmem [thread:$0]  %s21_s28, 128, %s23_s8, [#allocation3], %s474_s29, %s474_s29, %s475_s30  }
   0xa   :  { %s50_s12 = sshll.u32 %s477_s1, 4  ;;  %s51_s12 = int_to_ptr.vmem [resolvable:$true] %s50_s12 }
   0xb   :  { %56 = dma.hbm_to_vmem [thread:$0]  %s49_s11, 256, %s51_s12, [#allocation6], %s474_s29, %s474_s29, %s475_s30  }
   0xc   :  { %465 = dma.done.wait [#allocation3], 128  }
   0xd   :  { %466 = vsyncadd [#allocation3], 4294967168 }
   0xe   :  { %467 = dma.done.wait [#allocation6], 512  }
   0xf   :  { %468 = vsyncadd [#allocation6], 4294966784  ;;  %v330_v0 = vld [vmem:[#allocation5 + $0x8] sm:$0xff]  ;;  %v329_v1 = vld [vmem:[#allocation5] sm:$0xff]  ;;  %vm99_vm0 = vcmask 261120   ;;  %v478_v13 = vmov 8.0  }
  0x10   :  { %109 = vmatpush.bf16.msra.mxu0 %v330_v0  ;;  %v328_v2 = vld [vmem:[#allocation2] sm:$0xff]  ;;  %v331_v4 = vld [vmem:[#allocation7] sm:$0xff]  ;;  %343 = vrcp.f32 %v478_v13  ;;  %s279_s18 = sshll.u32 %s542_s5, 4  ;;  %s290_s22 = sshll.u32 %s543_s6, 4  ;;  %s280_s18 = int_to_ptr.hbm [resolvable:$true] %s279_s18  ;;  %s291_s22 = int_to_ptr.hbm [resolvable:$true] %s290_s22 }
  0x11   :  { %v332_v3 = vld [vmem:[#allocation7 + $0x8] sm:$0xff] }
  0x12   :  { %149 = vmatpush.bf16.msra.mxu1 %v332_v3  ;;  %v341_v6 = vld [vmem:[%s539_s2] ss:$0 sm:$0xff]  ;;  %s479_s2 = smov [#allocation8]  }
  0x13   :  { %v342_v16 = vld [vmem:[%s541_s4] ss:$0 sm:$0xff]  ;;  %s277_s15 = sshll.u32 %s479_s2, 4  ;;  %s480_s4 = smov [#allocation9]   ;;  %s278_s15 = int_to_ptr.vmem [resolvable:$true] %s277_s15 }
  0x14   :  { %110 = vmatpush.bf16.msra.mxu0 %v329_v1  ;;  %s288_s19 = sshll.u32 %s480_s4, 4  ;;  %s289_s19 = int_to_ptr.vmem [resolvable:$true] %s288_s19 }
  0x16   :  { %150 = vmatpush.bf16.msra.mxu1 %v331_v4  ;;  %v344_v14 = vpop.eup %343 }
  0x17   :  { %318 = vmatmul.msk.bf16.vlgmr.msra.gmra.mxu0 %vm99_vm0, %v328_v2  ;;  %v186_v15 = vmul.f32 8.0, %v344_v14  ;;  %vm191_vm1 = vweird.f32 %v344_v14 }
  0x19   :  { %v187_v18 = vsub.f32 1.0, %v186_v15 }
  0x1b   :  { %v188_v21 = vmul.f32 %v344_v14, %v187_v18 }
  0x1d   :  { %v189_v24 = vadd.f32 %v344_v14, %v188_v21 }
  0x1f   :  { %v193_v28 = vsel %vm191_vm1, %v344_v14, %v189_v24 }
  0x94   :  { %v112_v5 = vpop.f32.mrf.mxu0 }
  0x95   :  { %v113_v7 = vadd.f32 %v341_v6, %v112_v5 }
  0x97   :  { %v117_v10 = vmax.f32 %v113_v7, 0.0 }
  0x9c   :  { %v114_v8 = vpop.f32.mrf.mxu0 }
  0x9d   :  { %v115_v9 = vadd.f32 %v341_v6, %v114_v8 }
  0x9f   :  { %v118_v11 = vmax.f32 %v115_v9, 0.0 }
  0xa1   :  { %v119_v12 = vpack.c.bf16 %v118_v11, %v117_v10 }
  0xa3   :  { %327 = vmatmul.msk.bf16.vlgmr.msra.gmra.mxu1 %vm99_vm0, %v119_v12 }
 0x120   :  { %v152_v17 = vpop.f32.mrf.mxu1 }
 0x121   :  { %v153_v19 = vadd.f32 %v342_v16, %v152_v17 }
 0x123   :  { %v178_v20 = vrot.slane %v153_v19, 4 }
 0x125   :  { %v179_v22 = vadd.f32 %v178_v20, %v153_v19 }
 0x127   :  { %v180_v23 = vrot.slane %v179_v22, 2 }
 0x128   :  { %v154_v25 = vpop.f32.mrf.mxu1 }
 0x129   :  { %v181_v26 = vadd.f32 %v180_v23, %v179_v22 }
 0x12b   :  { %v182_v27 = vrot.slane %v181_v26, 1 }
 0x12d   :  { %v183_v29 = vadd.f32 %v182_v27, %v181_v26 }
 0x12f   :  { %v199_v30 = vmul.f32 %v193_v28, %v183_v29 }
 0x131   :  { %v200_v31 = vsub.f32 %v153_v19, %v199_v30  ;;  %217 = vst [vmem:[#allocation8] sm:$0x1] %v199_v30 }
 0x132   :  { %282 = dma.vmem_to_hbm [thread:$0]  %s278_s15, 16, %s280_s18, [#allocation4]  }
 0x133   :  { %v204_v32 = vmul.f32 %v200_v31, %v200_v31 }
 0x135   :  { %v207_v33 = vrot.slane %v204_v32, 4 }
 0x137   :  { %v208_v34 = vadd.f32 %v207_v33, %v204_v32 }
 0x139   :  { %v209_v35 = vrot.slane %v208_v34, 2 }
 0x13b   :  { %v210_v36 = vadd.f32 %v209_v35, %v208_v34 }
 0x13d   :  { %v211_v37 = vrot.slane %v210_v36, 1 }
 0x13f   :  { %v212_v38 = vadd.f32 %v211_v37, %v210_v36 }
 0x141   :  { %218 = vst [vmem:[#allocation9] sm:$0x1] %v212_v38 }
 0x142   :  { %293 = dma.vmem_to_hbm [thread:$0]  %s289_s19, 16, %s291_s22, [#allocation10]  }
 0x143   :  { %469 = dma.done.wait [#allocation4], 16  }
 0x144   :  { %470 = vsyncadd [#allocation4], 4294967280 }
 0x145   :  { %471 = dma.done.wait [#allocation10], 16  }
 0x146   :  { %472 = vsyncadd [#allocation10], 4294967280 }
 0x147   :  { %302 = vsyncpa [#allocation3], 1 }
 0x148   :  { %303 = vsyncpa [#allocation6], 1 }
 0x149   :  { %304 = vsyncpa [#allocation4], 1 }
 0x14a   :  { %305 = vsyncpa [#allocation10], 1 }

</bundles_post_ra>
